<compile_context>
chip_gen: v7x
topology: tpu7x:2x2x1
jax: 0.10.0
libtpu: 0.0.40
codegen_flags: <defaults>
</compile_context>

<pallas_src>
import functools

import jax
import jax.numpy as jnp
from jax.experimental import pallas as pl
from jax.experimental.pallas import tpu as pltpu

LANE = 128      # vreg lane width / MXU granule (128 also fine on v6e/v7x at these toy dims)
SUBLANE = 8     # vreg sublane granule


def _round_up(n, m):
    return ((n + m - 1) // m) * m


def _cdiv(a, b):
    return -(-a // b)


def _dnn_kernel(n_layers, in_dim, k0_pad, *refs):
    """refs = (x_ref, w0, b0, w1, b1, ..., w_out, b_out, out_ref).

    x_ref  : (tile_b, in_dim) bf16 activations at their real (unpadded) width.
    w_i    : (Ki_pad, Ni_pad) bf16, zero-padded, VMEM-resident across grid steps.
    b_i    : (1, Ni_pad) f32, zero-padded.
    out_ref: (1, 1, tile_b) f32 lane-dense logits row for this batch tile.
    """
    x_ref = refs[0]
    out_ref = refs[-1]
    tile_b = x_ref.shape[0]

    # Lane-pad the streamed input up to the MXU granule inside VMEM (zeros match
    # the zero-padded weight rows, so padded lanes contribute nothing).
    h = x_ref[...]                                            # (tile_b, in_dim) bf16
    if in_dim < k0_pad:
        h = jnp.concatenate(
            [h, jnp.zeros((tile_b, k0_pad - in_dim), h.dtype)], axis=-1)

    for i in range(n_layers):
        w = refs[1 + 2 * i][...]                              # bf16 (resident)
        b = refs[2 + 2 * i][...]                              # f32
        hb = h if h.dtype == jnp.bfloat16 else h.astype(jnp.bfloat16)
        # MXU matmul in bf16 with f32 accumulation; bias + activation stay f32.
        h = jnp.dot(hb, w, preferred_element_type=jnp.float32) + b
        if i < n_layers - 1:
            # sigmoid(h) = 1 / (1 + exp(-h)): exp on EUP, approximate reciprocal
            # on EUP -> keeps the VALU slots free (v5e-friendly).
            h = pl.reciprocal(1.0 + jnp.exp(-h), approx=True)

    # h: (tile_b, N_out_pad) f32; the real logit is column 0.  Transpose on the
    # otherwise-idle XLU and store a lane-dense (1, tile_b) row.
    ht = jnp.transpose(h)                                     # (N_out_pad, tile_b)
    out_ref[0] = ht[:1, :].astype(out_ref.dtype)              # (1, tile_b)


def _choose_tiling(batch, max_tile_b):
    """Pick (tile_b, num_tiles) bounding pad waste to one sublane granule and
    keeping >= 2 grid steps for v7x megacore sharding when batch is large."""
    num_tiles = max(1, _cdiv(batch, max_tile_b))
    if num_tiles == 1 and batch >= 2 * LANE:
        num_tiles = 2                      # let ("parallel",) use both v7x TCs
    tile_b = _round_up(_cdiv(batch, num_tiles), SUBLANE)
    num_tiles = max(1, _cdiv(batch, tile_b))
    return tile_b, num_tiles


def dnn_forward(x, padded_params, *, max_tile_b=1024):
    """x: (batch, input_size) f32.
    padded_params: list of (W_pad (Ki_pad, Ni_pad) bf16, b_pad (1, Ni_pad) f32).
    Returns (batch, 1) f32 logits."""
    batch, in_dim = x.shape
    n_layers = len(padded_params)
    k0_pad = padded_params[0][0].shape[0]
    assert k0_pad == _round_up(in_dim, LANE), (k0_pad, in_dim)

    tile_b, num_tiles = _choose_tiling(batch, max_tile_b)
    b_pad = tile_b * num_tiles

    # Stream x in bf16 at its real feature width; only the batch dim is padded
    # (cheap: in_dim columns), fusing the pad + f32->bf16 cast in one pass.
    x_bf16 = jnp.zeros((b_pad, in_dim), jnp.bfloat16).at[:batch].set(
        x.astype(jnp.bfloat16))

    flat_inputs = [x_bf16]
    in_specs = [pl.BlockSpec((tile_b, in_dim), lambda i: (i, 0))]
    for w, b in padded_params:
        flat_inputs += [w, b]
        # Constant index_map -> weights/biases stay VMEM-resident across steps.
        # TODO(synk): for large hidden widths on v7x (64 MiB VMEM), add
        # pipeline_mode=pl.Buffered(1) here to drop the redundant second buffer.
        in_specs.append(pl.BlockSpec(w.shape, lambda i: (0, 0)))
        in_specs.append(pl.BlockSpec(b.shape, lambda i: (0, 0)))

    out = pl.pallas_call(
        functools.partial(_dnn_kernel, n_layers, in_dim, k0_pad),
        out_shape=jax.ShapeDtypeStruct((num_tiles, 1, tile_b), jnp.float32),
        grid=(num_tiles,),
        in_specs=in_specs,
        out_specs=pl.BlockSpec((1, 1, tile_b), lambda i: (i, 0, 0)),
        compiler_params=pltpu.CompilerParams(
            dimension_semantics=("parallel",),      # shard batch across TCs on v7x
            vmem_limit_bytes=32 * 1024 * 1024,
        ),
    )(*flat_inputs)

    # Compact output: (num_tiles, 1, tile_b) -> (batch, 1); the slice is tiny.
    return out.reshape(b_pad)[:batch].reshape(batch, 1)


def init_params(key, input_size, n_hidden):
    """nn.Linear-style init (uniform +-1/sqrt(fan_in)).

    Returns (padded_params, raw_params):
      padded_params: weights zero-padded to 128-lane granules (rows AND columns)
                     and cast to bf16; biases zero-padded in f32 — done once here.
      raw_params   : unpadded f32 (W (in,out), b (1,out)) for the pure-JAX reference.
    """
    dims = [input_size] + list(n_hidden) + [1]
    padded, raw = [], []
    for i in range(len(dims) - 1):
        key, kw, kb = jax.random.split(key, 3)
        fan_in, fan_out = dims[i], dims[i + 1]
        bound = 1.0 / (fan_in ** 0.5)
        w = jax.random.uniform(kw, (fan_in, fan_out), jnp.float32, -bound, bound)
        b = jax.random.uniform(kb, (1, fan_out), jnp.float32, -bound, bound)

        k_pad, n_pad = _round_up(fan_in, LANE), _round_up(fan_out, LANE)
        # Zero rows beyond fan_in and zero columns beyond fan_out are load-bearing:
        # they cancel the padded input lanes / padded hidden lanes (see header).
        w_pad = (jnp.zeros((k_pad, n_pad), jnp.bfloat16)
                 .at[:fan_in, :fan_out].set(w.astype(jnp.bfloat16)))
        b_pad = jnp.zeros((1, n_pad), jnp.float32).at[:, :fan_out].set(b)

        padded.append((w_pad, b_pad))
        raw.append((w, b))
    return padded, raw


def dnn_forward_ref(x, raw_params):
    """Pure-JAX reference with matching bf16-matmul / f32-accumulate numerics."""
    h = x
    n = len(raw_params)
    for i, (w, b) in enumerate(raw_params):
        h = jnp.dot(h.astype(jnp.bfloat16), w.astype(jnp.bfloat16),
                    preferred_element_type=jnp.float32) + b
        if i < n - 1:
            h = jax.nn.sigmoid(h)
    return h


if __name__ == "__main__":
    key = jax.random.PRNGKey(0)
    batch, input_size = 8, 16
    n_hidden = [32, 16]

    kx, kp = jax.random.split(key)
    x = jax.random.normal(kx, (batch, input_size), jnp.float32)
    padded_params, raw_params = init_params(kp, input_size, n_hidden)

    out = dnn_forward(x, padded_params)
    out = jax.block_until_ready(out)

    ref = dnn_forward_ref(x, raw_params)
    assert out.shape == (batch, 1), out.shape
    assert jnp.allclose(out, ref, atol=2e-2, rtol=2e-2), (out, ref)

    # TODO(synk): BCEWithLogitsLoss / optimizer are training-time members of the
    # PyTorch module and are not part of the forward pass, so they are not ported.
    print("KERNEL_OK")
</pallas_src>

<mosaic_0001>
module attributes {stable_mosaic.version = 11 : i64} {
  func.func @_dnn_kernel(%arg0: i32, %arg1: memref<8x16xbf16, #tpu.memory_space<vmem>>, %arg2: memref<128x128xbf16, #tpu.memory_space<vmem>>, %arg3: memref<1x128xf32, #tpu.memory_space<vmem>>, %arg4: memref<128x128xbf16, #tpu.memory_space<vmem>>, %arg5: memref<1x128xf32, #tpu.memory_space<vmem>>, %arg6: memref<128x128xbf16, #tpu.memory_space<vmem>>, %arg7: memref<1x128xf32, #tpu.memory_space<vmem>>, %arg8: memref<1x1x8xf32, #tpu.memory_space<vmem>>) attributes {dimension_semantics = [#tpu.dimension_semantics<parallel>], iteration_bounds = array<i64: 1>, scalar_prefetch = 0 : i64, scratch_operands = 0 : i64, tpu.core_type = #tpu.core_type<tc>, window_params = [{transform_indices = @transform_0, window_bounds = array<i64: 8, 16>}, {pipeline_mode = #tpu.pipeline_mode<synchronous>, transform_indices = @transform_1, window_bounds = array<i64: 128, 128>}, {pipeline_mode = #tpu.pipeline_mode<synchronous>, transform_indices = @transform_2, window_bounds = array<i64: 1, 128>}, {pipeline_mode = #tpu.pipeline_mode<synchronous>, transform_indices = @transform_3, window_bounds = array<i64: 128, 128>}, {pipeline_mode = #tpu.pipeline_mode<synchronous>, transform_indices = @transform_4, window_bounds = array<i64: 1, 128>}, {pipeline_mode = #tpu.pipeline_mode<synchronous>, transform_indices = @transform_5, window_bounds = array<i64: 128, 128>}, {pipeline_mode = #tpu.pipeline_mode<synchronous>, transform_indices = @transform_6, window_bounds = array<i64: 1, 128>}, {transform_indices = @transform_7, window_bounds = array<i64: 1, 1, 8>}]} {
    %c0 = arith.constant 0 : index
    %c0_0 = arith.constant 0 : index
    %0 = vector.load %arg1[%c0, %c0_0] : memref<8x16xbf16, #tpu.memory_space<vmem>>, vector<8x16xbf16>
    %cst = arith.constant 0.000000e+00 : bf16
    %1 = vector.broadcast %cst : bf16 to vector<8x112xbf16>
    %2 = tpu.concatenate %0, %1 in 1 : vector<8x16xbf16>, vector<8x112xbf16> -> vector<8x128xbf16>
    %c0_1 = arith.constant 0 : index
    %c0_2 = arith.constant 0 : index
    %3 = vector.load %arg2[%c0_1, %c0_2] : memref<128x128xbf16, #tpu.memory_space<vmem>>, vector<128x128xbf16>
    %c0_3 = arith.constant 0 : index
    %c0_4 = arith.constant 0 : index
    %4 = vector.load %arg3[%c0_3, %c0_4] : memref<1x128xf32, #tpu.memory_space<vmem>>, vector<1x128xf32>
    %cst_5 = arith.constant dense<0.000000e+00> : vector<8x128xf32>
    %5 = tpu.matmul %2, %3, %cst_5 {dimension_numbers = #tpu.dot_dimension_numbers<[1], [0], [0], [1], [0, 0, 1, 1], [], []>} : vector<8x128xbf16>, vector<128x128xbf16>, vector<8x128xf32> -> vector<8x128xf32>
    %6 = vector.broadcast %4 : vector<1x128xf32> to vector<8x128xf32>
    %7 = arith.addf %5, %6 : vector<8x128xf32>
    %cst_6 = arith.constant 0.000000e+00 : f32
    %8 = vector.broadcast %cst_6 : f32 to vector<8x128xf32>
    %9 = arith.subf %8, %7 : vector<8x128xf32>
    %10 = math.exp %9 : vector<8x128xf32>
    %cst_7 = arith.constant 1.000000e+00 : f32
    %11 = vector.broadcast %cst_7 : f32 to vector<8x128xf32>
    %12 = arith.addf %11, %10 : vector<8x128xf32>
    %13 = tpu.reciprocal %12 {approx = true} : vector<8x128xf32> -> vector<8x128xf32>
    %c0_8 = arith.constant 0 : index
    %c0_9 = arith.constant 0 : index
    %14 = vector.load %arg4[%c0_8, %c0_9] : memref<128x128xbf16, #tpu.memory_space<vmem>>, vector<128x128xbf16>
    %c0_10 = arith.constant 0 : index
    %c0_11 = arith.constant 0 : index
    %15 = vector.load %arg5[%c0_10, %c0_11] : memref<1x128xf32, #tpu.memory_space<vmem>>, vector<1x128xf32>
    %16 = arith.truncf %13 : vector<8x128xf32> to vector<8x128xbf16>
    %cst_12 = arith.constant dense<0.000000e+00> : vector<8x128xf32>
    %17 = tpu.matmul %16, %14, %cst_12 {dimension_numbers = #tpu.dot_dimension_numbers<[1], [0], [0], [1], [0, 0, 1, 1], [], []>} : vector<8x128xbf16>, vector<128x128xbf16>, vector<8x128xf32> -> vector<8x128xf32>
    %18 = vector.broadcast %15 : vector<1x128xf32> to vector<8x128xf32>
    %19 = arith.addf %17, %18 : vector<8x128xf32>
    %cst_13 = arith.constant 0.000000e+00 : f32
    %20 = vector.broadcast %cst_13 : f32 to vector<8x128xf32>
    %21 = arith.subf %20, %19 : vector<8x128xf32>
    %22 = math.exp %21 : vector<8x128xf32>
    %cst_14 = arith.constant 1.000000e+00 : f32
    %23 = vector.broadcast %cst_14 : f32 to vector<8x128xf32>
    %24 = arith.addf %23, %22 : vector<8x128xf32>
    %25 = tpu.reciprocal %24 {approx = true} : vector<8x128xf32> -> vector<8x128xf32>
    %c0_15 = arith.constant 0 : index
    %c0_16 = arith.constant 0 : index
    %26 = vector.load %arg6[%c0_15, %c0_16] : memref<128x128xbf16, #tpu.memory_space<vmem>>, vector<128x128xbf16>
    %c0_17 = arith.constant 0 : index
    %c0_18 = arith.constant 0 : index
    %27 = vector.load %arg7[%c0_17, %c0_18] : memref<1x128xf32, #tpu.memory_space<vmem>>, vector<1x128xf32>
    %28 = arith.truncf %25 : vector<8x128xf32> to vector<8x128xbf16>
    %cst_19 = arith.constant dense<0.000000e+00> : vector<8x128xf32>
    %29 = tpu.matmul %28, %26, %cst_19 {dimension_numbers = #tpu.dot_dimension_numbers<[1], [0], [0], [1], [0, 0, 1, 1], [], []>} : vector<8x128xbf16>, vector<128x128xbf16>, vector<8x128xf32> -> vector<8x128xf32>
    %30 = vector.broadcast %27 : vector<1x128xf32> to vector<8x128xf32>
    %31 = arith.addf %29, %30 : vector<8x128xf32>
    %32 = tpu.transpose %31, [1, 0] : vector<8x128xf32> -> vector<128x8xf32>
    %33 = vector.extract_strided_slice %32 {offsets = [0, 0], sizes = [1, 8], strides = [1, 1]} : vector<128x8xf32> to vector<1x8xf32>
    %c0_20 = arith.constant 0 : index
    %c0_21 = arith.constant 0 : index
    %c0_22 = arith.constant 0 : index
    %34 = vector.load %arg8[%c0_20, %c0_21, %c0_22] : memref<1x1x8xf32, #tpu.memory_space<vmem>>, vector<1x1x8xf32>
    %35 = vector.shape_cast %34 : vector<1x1x8xf32> to vector<1x8xf32>
    %36 = vector.shape_cast %33 : vector<1x8xf32> to vector<1x1x8xf32>
    tpu.vector_store %arg8[%c0_20, %c0_21, %c0_22], %36 {strides = array<i32>} : memref<1x1x8xf32, #tpu.memory_space<vmem>>, vector<1x1x8xf32>,
    return
  }
  func.func @transform_0(%arg0: i32) -> (i32, i32) {
    %c0_i32 = arith.constant 0 : i32
    %c0_i32_0 = arith.constant 0 : i32
    return %arg0, %c0_i32 : i32, i32
  }
  func.func @transform_1(%arg0: i32) -> (i32, i32) {
    %c0_i32 = arith.constant 0 : i32
    %c0_i32_0 = arith.constant 0 : i32
    %c0_i32_1 = arith.constant 0 : i32
    return %c0_i32, %c0_i32_0 : i32, i32
  }
  func.func @transform_2(%arg0: i32) -> (i32, i32) {
    %c0_i32 = arith.constant 0 : i32
    %c0_i32_0 = arith.constant 0 : i32
    %c0_i32_1 = arith.constant 0 : i32
    return %c0_i32, %c0_i32_0 : i32, i32
  }
  func.func @transform_3(%arg0: i32) -> (i32, i32) {
    %c0_i32 = arith.constant 0 : i32
    %c0_i32_0 = arith.constant 0 : i32
    %c0_i32_1 = arith.constant 0 : i32
    return %c0_i32, %c0_i32_0 : i32, i32
  }
  func.func @transform_4(%arg0: i32) -> (i32, i32) {
    %c0_i32 = arith.constant 0 : i32
    %c0_i32_0 = arith.constant 0 : i32
    %c0_i32_1 = arith.constant 0 : i32
    return %c0_i32, %c0_i32_0 : i32, i32
  }
  func.func @transform_5(%arg0: i32) -> (i32, i32) {
    %c0_i32 = arith.constant 0 : i32
    %c0_i32_0 = arith.constant 0 : i32
    %c0_i32_1 = arith.constant 0 : i32
    return %c0_i32, %c0_i32_0 : i32, i32
  }
  func.func @transform_6(%arg0: i32) -> (i32, i32) {
    %c0_i32 = arith.constant 0 : i32
    %c0_i32_0 = arith.constant 0 : i32
    %c0_i32_1 = arith.constant 0 : i32
    return %c0_i32, %c0_i32_0 : i32, i32
  }
  func.func @transform_7(%arg0: i32) -> (i32, i32, i32) {
    %c0_i32 = arith.constant 0 : i32
    %c0_i32_0 = arith.constant 0 : i32
    %c0_i32_1 = arith.constant 0 : i32
    return %arg0, %c0_i32, %c0_i32_0 : i32, i32, i32
  }
}

</mosaic_0001>

<bundles_post_ra>
// kernel: tpu_custom_call.1
= control target key start
LH: loop header
LB: loop body
LE: loop exit
PB: predicated region body
PF: predicated region fallthrough
CT: control target
= control target key end

     0   :  { %12 = vsyncpa [#allocation3], 0  ;;  %s914_s0 = inlined_call_operand.hbm [shape: bf16[8,16], index: 0, kind: input, shape index: {}]   ;;  %s915_s1 = inlined_call_operand.hbm [shape: bf16[128,128], index: 1, kind: input, shape index: {}]   ;;  %s916_s2 = inlined_call_operand.vmem [shape: f32[1,128], index: 2, kind: input, shape index: {}]   ;;  %s917_s3 = inlined_call_operand.hbm [shape: bf16[128,128], index: 3, kind: input, shape index: {}]   ;;  %s918_s4 = inlined_call_operand.vmem [shape: f32[1,128], index: 4, kind: input, shape index: {}]   ;;  %s919_s5 = inlined_call_operand.hbm [shape: bf16[128,128], index: 5, kind: input, shape index: {}]   ;;  %s920_s6 = inlined_call_operand.vmem [shape: f32[1,128], index: 6, kind: input, shape index: {}]   ;;  %s921_s7 = inlined_call_operand.hbm [shape: f32[1,1,8], index: 7, kind: output, shape index: {}]  }
   0x1   :  { %13 = vsyncpa [#allocation6], 0 }
   0x2   :  { %14 = vsyncpa [#allocation9], 0 }
   0x3   :  { %15 = vsyncpa [#allocation4], 0  ;;  %s757_s24 = smov [#allocation5]   ;;  %s639_s28 = scalar_lea.hbm %s915_s1, 1024 }
   0x4   :  { %s31_s25 = sshll.u32 %s757_s24, 4  ;;  %p640_p0 = scmp.ne.s32.totalorder %s915_s1, %s639_s28  ;;  %s32_s25 = int_to_ptr.vmem [resolvable:$true] %s31_s25 }
   0x5   :  { %p643_p1 = scmp.lt.u32.totalorder %s639_s28, %s915_s1 }
   0x7   :  { %p645_p2 = pnand %p643_p1, %p640_p0 }
   0x9   :  { %648 = shalt.err (!%p645_p2)
}
   0xa   :  { %s649_s10 = scalar_lea.vmem %s32_s25, 1024  ;;  %p654_p4 = scmp.lt.s32.totalorder %s32_s25, %s32_s25 }
   0xb   :  { %p650_p3 = scmp.ne.s32.totalorder %s32_s25, %s649_s10  ;;  %p655_p5 = scmp.lt.s32.totalorder %s649_s10, %s649_s10 }
   0xd   :  { %p656_p6 = por %p655_p5, %p654_p4 }
   0xf   :  { %p657_p7 = pnand %p656_p6, %p650_p3 }
  0x11   :  { %660 = shalt.err (!%p657_p7)
}
  0x12   :  { %s758_s11 = smov 64   ;;  %s759_s12 = smov 4  }
  0x13   :  { %37 = dma.hbm_to_vmem [thread:$0]  %s915_s1, 1024, %s32_s25, [#allocation6], %s758_s11, %s758_s11, %s759_s12  }
  0x14   :  { %s760_s15 = smov [#allocation2]   ;;  %s761_s17 = smov [#allocation7]  }
  0x15   :  { %s22_s16 = sshll.u32 %s760_s15, 4  ;;  %s45_s18 = sshll.u32 %s761_s17, 4  ;;  %s23_s16 = int_to_ptr.vmem [resolvable:$true] %s22_s16  ;;  %s46_s18 = int_to_ptr.vmem [resolvable:$true] %s45_s18 }
  0x16   :  { %s661_s21 = scalar_lea.hbm %s914_s0, 64 }
  0x17   :  { %p662_p8 = scmp.ne.s32.totalorder %s914_s0, %s661_s21  ;;  %p665_p9 = scmp.lt.u32.totalorder %s661_s21, %s914_s0 }
  0x19   :  { %p667_p10 = pnand %p665_p9, %p662_p8 }
  0x1b   :  { %670 = shalt.err (!%p667_p10)
}
  0x1c   :  { %s671_s1 = scalar_lea.vmem %s23_s16, 64  ;;  %p676_p12 = scmp.lt.s32.totalorder %s23_s16, %s23_s16 }
  0x1d   :  { %p672_p11 = scmp.ne.s32.totalorder %s23_s16, %s671_s1  ;;  %p677_p13 = scmp.lt.s32.totalorder %s671_s1, %s671_s1 }
  0x1f   :  { %p678_p0 = por %p677_p13, %p676_p12 }
  0x21   :  { %p679_p1 = pnand %p678_p0, %p672_p11 }
  0x23   :  { %682 = shalt.err (!%p679_p1)
}
  0x24   :  { %25 = dma.hbm_to_vmem [thread:$0]  %s914_s0, 64, %s23_s16, [#allocation3]  }
  0x25   :  { %s683_s30 = scalar_lea.hbm %s917_s3, 1024 }
  0x26   :  { %p684_p2 = scmp.ne.s32.totalorder %s917_s3, %s683_s30  ;;  %p687_p3 = scmp.lt.u32.totalorder %s683_s30, %s917_s3 }
  0x28   :  { %p689_p4 = pnand %p687_p3, %p684_p2 }
  0x2a   :  { %692 = shalt.err (!%p689_p4)
}
  0x2b   :  { %s693_s14 = scalar_lea.vmem %s46_s18, 1024  ;;  %p698_p6 = scmp.lt.s32.totalorder %s46_s18, %s46_s18 }
  0x2c   :  { %p694_p5 = scmp.ne.s32.totalorder %s46_s18, %s693_s14  ;;  %p699_p7 = scmp.lt.s32.totalorder %s693_s14, %s693_s14 }
  0x2e   :  { %p700_p8 = por %p699_p7, %p698_p6 }
  0x30   :  { %p701_p9 = pnand %p700_p8, %p694_p5 }
  0x32   :  { %704 = shalt.err (!%p701_p9)
}
  0x33   :  { %51 = dma.hbm_to_vmem [thread:$0]  %s917_s3, 1024, %s46_s18, [#allocation6], %s758_s11, %s758_s11, %s759_s12  }
  0x34   :  { %s762_s16 = smov [#allocation8]   ;;  %s705_s21 = scalar_lea.hbm %s919_s5, 1024 }
  0x35   :  { %s59_s17 = sshll.u32 %s762_s16, 4  ;;  %p706_p10 = scmp.ne.s32.totalorder %s919_s5, %s705_s21  ;;  %s60_s17 = int_to_ptr.vmem [resolvable:$true] %s59_s17 }
  0x36   :  { %p709_p11 = scmp.lt.u32.totalorder %s705_s21, %s919_s5 }
  0x38   :  { %p711_p12 = pnand %p709_p11, %p706_p10 }
  0x3a   :  { %714 = shalt.err (!%p711_p12)
}
  0x3b   :  { %s715_s1 = scalar_lea.vmem %s60_s17, 1024  ;;  %p720_p0 = scmp.lt.s32.totalorder %s60_s17, %s60_s17 }
  0x3c   :  { %p716_p13 = scmp.ne.s32.totalorder %s60_s17, %s715_s1  ;;  %p721_p1 = scmp.lt.s32.totalorder %s715_s1, %s715_s1 }
  0x3e   :  { %p722_p2 = por %p721_p1, %p720_p0 }
  0x40   :  { %p723_p3 = pnand %p722_p2, %p716_p13 }
  0x42   :  { %726 = shalt.err (!%p723_p3)
}
  0x43   :  { %65 = dma.hbm_to_vmem [thread:$0]  %s919_s5, 1024, %s60_s17, [#allocation9], %s758_s11, %s758_s11, %s759_s12  }
  0x44   :  { %749 = dma.done.wait [#allocation3], 64  }
  0x45   :  { %750 = vsyncadd [#allocation3], 4294967232 }
  0x46   :  { %751 = dma.done.wait [#allocation6], 2048  }
  0x47   :  { %752 = vsyncadd [#allocation6], 4294965248 }
  0x48   :  { %753 = dma.done.wait [#allocation9], 1024  }
  0x49   :  { %754 = vsyncadd [#allocation9], 4294966272  ;;  %v763_v0 = vmov 0.0   ;;  %vm764_vm0 = vmmov 0   ;;  %v607_v1 = vld [vmem:[#allocation5] sm:$0xff]   ;;  %v608_v2 = vld [vmem:[#allocation5 + $0x8] sm:$0xff]  }
  0x4a   :  { %538 = vmatprep.subr.bf16.mxu0 %v763_v0  ;;  %554 = vmatprep.mubr.msk.bf16.mxu0 %vm764_vm0, %v763_v0  ;;  %v609_v3 = vld [vmem:[#allocation5 + $0x10] sm:$0xff]   ;;  %v610_v4 = vld [vmem:[#allocation5 + $0x18] sm:$0xff]   ;;  %v611_v5 = vld [vmem:[#allocation5 + $0x20] sm:$0xff]   ;;  %vm82_vm1 = vcmask 130048   ;;  %vm464_vm2 = vcmask 57344  }
  0x4b   :  { %558 = vmatprep.subr.bf16.mxu1 %v763_v0  ;;  %574 = vmatprep.mubr.msk.bf16.mxu1 %vm764_vm0, %v763_v0  ;;  %v612_v6 = vld [vmem:[#allocation5 + $0x28] sm:$0xff]   ;;  %v613_v7 = vld [vmem:[#allocation5 + $0x30] sm:$0xff]   ;;  %v614_v8 = vld [vmem:[#allocation5 + $0x38] sm:$0xff]  }
  0x4c   :  { %539 = vmatpush3.bf16.msra.mxu0 %v607_v1  ;;  %v81_v9 = vld [vmem:[#allocation2] sm:$0xf]  ;;  %v615_v10 = vld [vmem:[#allocation7] sm:$0xff]   ;;  %v616_v11 = vld [vmem:[#allocation7 + $0x8] sm:$0xff]  }
  0x4d   :  { %540 = vmatprep.subr.bf16.mxu0 %v763_v0  ;;  %559 = vmatpush3.bf16.msra.mxu1 %v615_v10  ;;  %v617_v12 = vld [vmem:[#allocation7 + $0x10] sm:$0xff]   ;;  %v618_v13 = vld [vmem:[#allocation7 + $0x18] sm:$0xff]   ;;  %v619_v14 = vld [vmem:[#allocation7 + $0x20] sm:$0xff]  }
  0x4e   :  { %560 = vmatprep.subr.bf16.mxu1 %v763_v0  ;;  %v620_v15 = vld [vmem:[#allocation7 + $0x28] sm:$0xff]   ;;  %v621_v16 = vld [vmem:[#allocation7 + $0x30] sm:$0xff]   ;;  %v622_v17 = vld [vmem:[#allocation7 + $0x38] sm:$0xff]  }
  0x4f   :  { %v483_v18 = vld [vmem:[%s916_s2] ss:$0 sm:$0xff]  ;;  %v623_v30 = vld [vmem:[#allocation8] sm:$0xff]   ;;  %v624_v31 = vld [vmem:[#allocation8 + $0x8] sm:$0xff]  }
  0x50   :  { %541 = vmatpush3.bf16.msra.mxu0 %v608_v2  ;;  %v625_v32 = vld [vmem:[#allocation8 + $0x10] sm:$0xff]   ;;  %v626_v33 = vld [vmem:[#allocation8 + $0x18] sm:$0xff]   ;;  %v627_v34 = vld [vmem:[#allocation8 + $0x20] sm:$0xff]  }
  0x51   :  { %542 = vmatprep.subr.bf16.mxu0 %v763_v0  ;;  %561 = vmatpush3.bf16.msra.mxu1 %v616_v11  ;;  %v628_v35 = vld [vmem:[#allocation8 + $0x28] sm:$0xff]   ;;  %v629_v36 = vld [vmem:[#allocation8 + $0x30] sm:$0xff]   ;;  %v630_v37 = vld [vmem:[#allocation8 + $0x38] sm:$0xff]  }
  0x52   :  { %562 = vmatprep.subr.bf16.mxu1 %v763_v0  ;;  %v493_v38 = vld [vmem:[%s918_s4] ss:$0 sm:$0xff]  ;;  %s765_s4 = smov [#allocation10]  }
  0x53   :  { %v502_v50 = vld [vmem:[%s920_s6] ss:$0 sm:$0xff]  ;;  %s472_s28 = sshll.u32 %s765_s4, 4  ;;  %s473_s28 = int_to_ptr.vmem [resolvable:$true] %s472_s28 }
  0x54   :  { %543 = vmatpush3.bf16.msra.mxu0 %v609_v3  ;;  %s727_s29 = scalar_lea.vmem %s473_s28, 16  ;;  %s731_s30 = scalar_lea.vmem %s473_s28, 32 }
  0x55   :  { %544 = vmatprep.subr.bf16.mxu0 %v763_v0  ;;  %563 = vmatpush3.bf16.msra.mxu1 %v617_v12  ;;  %p728_p4 = scmp.ne.s32.totalorder %s473_s28, %s727_s29  ;;  %p732_p5 = scmp.lt.s32.totalorder %s473_s28, %s473_s28 }
  0x56   :  { %564 = vmatprep.subr.bf16.mxu1 %v763_v0  ;;  %p733_p6 = scmp.lt.s32.totalorder %s731_s30, %s727_s29 }
  0x58   :  { %545 = vmatpush3.bf16.msra.mxu0 %v610_v4  ;;  %p734_p7 = por %p733_p6, %p732_p5 }
  0x59   :  { %546 = vmatprep.subr.bf16.mxu0 %v763_v0  ;;  %565 = vmatpush3.bf16.msra.mxu1 %v618_v13 }
  0x5a   :  { %566 = vmatprep.subr.bf16.mxu1 %v763_v0  ;;  %p735_p8 = pnand %p734_p7, %p728_p4 }
  0x5c   :  { %547 = vmatpush3.bf16.msra.mxu0 %v611_v5 }
  0x5d   :  { %548 = vmatprep.subr.bf16.mxu0 %v763_v0  ;;  %567 = vmatpush3.bf16.msra.mxu1 %v619_v14 }
  0x5e   :  { %568 = vmatprep.subr.bf16.mxu1 %v763_v0 }
  0x60   :  { %549 = vmatpush3.bf16.msra.mxu0 %v612_v6 }
  0x61   :  { %550 = vmatprep.subr.bf16.mxu0 %v763_v0  ;;  %569 = vmatpush3.bf16.msra.mxu1 %v620_v15 }
  0x62   :  { %570 = vmatprep.subr.bf16.mxu1 %v763_v0 }
  0x64   :  { %551 = vmatpush3.bf16.msra.mxu0 %v613_v7 }
  0x65   :  { %552 = vmatprep.subr.bf16.mxu0 %v763_v0  ;;  %571 = vmatpush3.bf16.msra.mxu1 %v621_v16 }
  0x66   :  { %572 = vmatprep.subr.bf16.mxu1 %v763_v0 }
  0x68   :  { %553 = vmatpush3.bf16.msra.mxu0 %v614_v8 }
  0x69   :  { %578 = vmatprep.subr.bf16.mxu0 %v763_v0  ;;  %573 = vmatpush3.bf16.msra.mxu1 %v622_v17 }
  0x6b   :  { %555 = vmatmul.mubr.msk.bf16.vlgmr.msra.gmra.mrb[0].mxu0 %vm82_vm1, %v81_v9 }
  0x6c   :  { %594 = vmatprep.mubr.msk.bf16.mxu0 %vm764_vm0, %v763_v0  ;;  %579 = vmatpush3.bf16.msra.mxu0 %v623_v30 }
  0x6d   :  { %580 = vmatprep.subr.bf16.mxu0 %v763_v0 }
  0x70   :  { %581 = vmatpush3.bf16.msra.mxu0 %v624_v31 }
  0x71   :  { %582 = vmatprep.subr.bf16.mxu0 %v763_v0 }
  0x74   :  { %583 = vmatpush3.bf16.msra.mxu0 %v625_v32 }
  0x75   :  { %584 = vmatprep.subr.bf16.mxu0 %v763_v0 }
  0x78   :  { %585 = vmatpush3.bf16.msra.mxu0 %v626_v33 }
  0x79   :  { %586 = vmatprep.subr.bf16.mxu0 %v763_v0 }
  0x7c   :  { %587 = vmatpush3.bf16.msra.mxu0 %v627_v34 }
  0x7d   :  { %588 = vmatprep.subr.bf16.mxu0 %v763_v0 }
  0x80   :  { %589 = vmatpush3.bf16.msra.mxu0 %v628_v35 }
  0x81   :  { %590 = vmatprep.subr.bf16.mxu0 %v763_v0 }
  0x84   :  { %591 = vmatpush3.bf16.msra.mxu0 %v629_v36 }
  0x85   :  { %592 = vmatprep.subr.bf16.mxu0 %v763_v0 }
  0x88   :  { %593 = vmatpush3.bf16.msra.mxu0 %v630_v37 }
 0x13e   :  { %v192_v19 = vpop.f32.mrb[0].mxu0 }
 0x13f   :  { %v193_v20 = vadd.f32 %v483_v18, %v192_v19  ;;  %v556_v21 = vpop.f32.mrb[1].mxu0 }
 0x140   :  { %v195_v22 = vpop.f32.mrb[2].mxu0 }
 0x141   :  { %v198_v23 = vsub.f32 0.0, %v193_v20  ;;  %v557_v24 = vpop.f32.mrb[3].mxu0 }
 0x143   :  { %v199_v25 = vmul.f32 1.442695, %v198_v23 }
 0x145   :  { %631 = vpow2.f32 %v199_v25 }
 0x14f   :  { %v632_v26 = vpop.eup %631 }
 0x150   :  { %v201_v27 = vadd.f32 1.0, %v632_v26 }
 0x152   :  { %633 = vrcp.f32 %v201_v27 }
 0x15c   :  { %v634_v28 = vpop.eup %633 }
 0x15d   :  { %v220_v29 = vpack.c.bf16 %v634_v28, %v634_v28 }
 0x15f   :  { %575 = vmatmul.mubr.bf16.vlgmr.msra.gmra.mrb[0].mxu1 %v220_v29 }
 0x232   :  { %v309_v39 = vpop.f32.mrb[0].mxu1 }
 0x233   :  { %v310_v40 = vadd.f32 %v493_v38, %v309_v39  ;;  %v576_v41 = vpop.f32.mrb[1].mxu1 }
 0x234   :  { %v312_v42 = vpop.f32.mrb[2].mxu1 }
 0x235   :  { %v315_v43 = vsub.f32 0.0, %v310_v40  ;;  %v577_v44 = vpop.f32.mrb[3].mxu1 }
 0x237   :  { %v316_v45 = vmul.f32 1.442695, %v315_v43 }
 0x239   :  { %635 = vpow2.f32 %v316_v45 }
 0x243   :  { %v636_v46 = vpop.eup %635 }
 0x244   :  { %v318_v47 = vadd.f32 1.0, %v636_v46 }
 0x246   :  { %637 = vrcp.f32 %v318_v47 }
 0x250   :  { %v638_v48 = vpop.eup %637 }
 0x251   :  { %v337_v49 = vpack.c.bf16 %v638_v48, %v638_v48 }
 0x253   :  { %595 = vmatmul.mubr.bf16.vlgmr.msra.gmra.mrb[4].mxu0 %v337_v49 }
 0x326   :  { %v426_v51 = vpop.f32.mrb[4].mxu0 }
 0x327   :  { %v596_v52 = vpop.f32.mrb[5].mxu0  ;;  %v427_v53 = vadd.f32 %v502_v50, %v426_v51 }
 0x328   :  { %v429_v54 = vpop.f32.mrb[6].mxu0 }
 0x329   :  { %432 = vxpose.xlu0.b32.start.end [1/1] (short) (narrow) %v427_v53, 8  ;;  %v597_v55 = vpop.f32.mrb[7].mxu0 }
 0x3a9   :  { %v448_v56 = vpop.trf.xlu0 }
 0x3aa   :  { %465 = vst.msk [vmem:[#allocation10] sm:$0x1] %vm464_vm2, %v448_v56 }
 0x3ab   :  { %738 = shalt.err (!%p735_p8)
}
 0x3ac   :  { %s739_s9 = scalar_lea.hbm %s921_s7, 16 }
 0x3ad   :  { %p740_p9 = scmp.ne.s32.totalorder %s921_s7, %s739_s9  ;;  %p743_p10 = scmp.lt.u32.totalorder %s739_s9, %s921_s7 }
 0x3af   :  { %p745_p11 = pnand %p743_p10, %p740_p9 }
 0x3b1   :  { %748 = shalt.err (!%p745_p11)
}
 0x3b2   :  { %475 = dma.vmem_to_hbm [thread:$0]  %s473_s28, 16, %s921_s7, [#allocation4]  }
 0x3b3   :  { %755 = dma.done.wait [#allocation4], 16  }
 0x3b4   :  { %756 = vsyncadd [#allocation4], 4294967280 }
 0x3b5   :  { %479 = vsyncpa [#allocation3], 1 }
 0x3b6   :  { %480 = vsyncpa [#allocation6], 1 }
 0x3b7   :  { %481 = vsyncpa [#allocation9], 1 }
 0x3b8   :  { %482 = vsyncpa [#allocation4], 1 }

</bundles_post_ra>
